<compile_context>
chip_gen: v7x
topology: tpu7x:2x2x1
jax: 0.10.0
libtpu: 0.0.40
codegen_flags: <defaults>
</compile_context>

<pallas_src>
import jax
import jax.numpy as jnp
from jax.experimental import pallas as pl
from jax.experimental.pallas import tpu as pltpu

IGNORE_INDEX = 255

_LANE = 128
_MAX_TP = 16384                          # pixel-tile lanes (multiple of 128)
_TARGET_BLOCK_BYTES = 2 * 1024 * 1024    # ~2 MiB of logits per input buffer
_VMEM_LIMIT = 48 * 1024 * 1024           # < 64 MiB physical on v7x; fine on v5e/v6e


def _ce_kernel(x_ref, t_ref, loss_ref, cnt_ref):
    # x_ref:    (TB, C, TP) logits tile
    # t_ref:    (TB, 1, TP) int32 targets tile
    # loss_ref: (1, 1, TP) f32 lane-wise partial loss sums (resident over pixel axis)
    # cnt_ref:  (1, 1, TP) f32 lane-wise partial valid-pixel counts
    p = pl.program_id(1)

    @pl.when(p == 0)
    def _():
        loss_ref[...] = jnp.zeros_like(loss_ref)
        cnt_ref[...] = jnp.zeros_like(cnt_ref)

    x = x_ref[...].astype(jnp.float32)                      # (TB, C, TP)
    t = t_ref[...].astype(jnp.int32)                        # (TB, 1, TP)

    # numerically stable log-softmax terms over the class (sublane) axis
    m = jnp.max(x, axis=1, keepdims=True)                   # (TB, 1, TP)
    xm = x - m
    log_z = jnp.log(jnp.sum(jnp.exp(xm), axis=1, keepdims=True))       # (TB,1,TP)

    # gather (x_t - m) at the target class via one-hot select over C
    # (reuses xm so the shifted logits are not recomputed)
    cls = jax.lax.broadcasted_iota(jnp.int32, x.shape, 1)               # (TB,C,TP)
    xm_t = jnp.sum(jnp.where(cls == t, xm, 0.0), axis=1, keepdims=True)  # (TB,1,TP)

    # fused masking: multiply by valid mask instead of a second select
    valid_f = (t != IGNORE_INDEX).astype(jnp.float32)                   # (TB,1,TP)
    loss = (log_z - xm_t) * valid_f                                     # (TB,1,TP)

    loss_ref[...] += jnp.sum(loss, axis=0, keepdims=True)               # (1,1,TP)
    cnt_ref[...] += jnp.sum(valid_f, axis=0, keepdims=True)             # (1,1,TP)


def _choose_tiles(N, C, P, itemsize):
    """Pick (TB frames per block, TP pixel lanes per block, padded P)."""
    p128 = ((P + _LANE - 1) // _LANE) * _LANE
    tp = min(p128, _MAX_TP)                       # multiple of 128
    p_pad = ((P + tp - 1) // tp) * tp             # pad P up to a multiple of TP
    tb_max = max(1, _TARGET_BLOCK_BYTES // (tp * C * itemsize))
    tb = 1
    for d in range(1, N + 1):                     # largest divisor of N <= tb_max
        if N % d == 0 and d <= tb_max:
            tb = d
    return tb, tp, p_pad


def seg_loss_ce(predicted_scores, targets):
    """predicted_scores: (B, L, C, H, W) float; targets: (B, L, H, W) int.

    Equivalent to F.cross_entropy(scores.view(B*L, C, H, W),
                                  targets.view(B*L, H, W), ignore_index=255)
    (mean reduction over non-ignored pixels).
    """
    B, L, C, H, W = predicted_scores.shape
    N, P = B * L, H * W

    itemsize = jnp.dtype(predicted_scores.dtype).itemsize
    TB, TP, P_pad = _choose_tiles(N, C, P, itemsize)

    logits = predicted_scores.reshape(N, C, P)               # (N, C, P)
    tgt = targets.reshape(N, 1, P).astype(jnp.int32)         # (N, 1, P)
    if P_pad != P:
        # pad pixel axis: logits with 0 (finite), targets with ignore_index
        logits = jnp.pad(logits, ((0, 0), (0, 0), (0, P_pad - P)))
        tgt = jnp.pad(tgt, ((0, 0), (0, 0), (0, P_pad - P)),
                      constant_values=IGNORE_INDEX)

    num_n = N // TB
    num_p = P_pad // TP

    loss_part, cnt_part = pl.pallas_call(
        _ce_kernel,
        out_shape=(
            jax.ShapeDtypeStruct((num_n, 1, TP), jnp.float32),
            jax.ShapeDtypeStruct((num_n, 1, TP), jnp.float32),
        ),
        grid_spec=pltpu.PrefetchScalarGridSpec(
            num_scalar_prefetch=0,
            grid=(num_n, num_p),
            in_specs=[
                pl.BlockSpec((TB, C, TP), lambda i, p: (i, 0, p)),
                pl.BlockSpec((TB, 1, TP), lambda i, p: (i, 0, p)),
            ],
            out_specs=[
                pl.BlockSpec((1, 1, TP), lambda i, p: (i, 0, 0)),
                pl.BlockSpec((1, 1, TP), lambda i, p: (i, 0, 0)),
            ],
        ),
        compiler_params=pltpu.CompilerParams(
            dimension_semantics=("parallel", "arbitrary"),
            vmem_limit_bytes=_VMEM_LIMIT,
        ),
    )(logits, tgt)

    return (jnp.sum(loss_part) / jnp.sum(cnt_part)).astype(jnp.float32)


def _seg_loss_ce_ref(predicted_scores, targets):
    # plain-JAX reference for verification
    B, L, C, H, W = predicted_scores.shape
    x = predicted_scores.reshape(B * L, C, H * W).astype(jnp.float32)
    t = targets.reshape(B * L, H * W).astype(jnp.int32)
    lse = jax.scipy.special.logsumexp(x, axis=1)                 # (N, P)
    x_t = jnp.take_along_axis(
        x, jnp.clip(t, 0, C - 1)[:, None, :], axis=1)[:, 0, :]   # (N, P)
    valid = (t != IGNORE_INDEX).astype(jnp.float32)
    loss = (lse - x_t) * valid
    return jnp.sum(loss) / jnp.sum(valid)


if __name__ == "__main__":
    key = jax.random.PRNGKey(0)
    B, L, C, H, W = 2, 2, 4, 16, 16

    k1, k2, k3 = jax.random.split(key, 3)
    scores = jax.random.normal(k1, (B, L, C, H, W), dtype=jnp.float32)
    tgts = jax.random.randint(k2, (B, L, H, W), 0, C, dtype=jnp.int32)
    # sprinkle in some ignored pixels (ignore_index=255)
    ignore_mask = jax.random.bernoulli(k3, 0.1, (B, L, H, W))
    tgts = jnp.where(ignore_mask, jnp.int32(IGNORE_INDEX), tgts)

    out = seg_loss_ce(scores, tgts)
    out = jax.block_until_ready(out)

    ref = _seg_loss_ce_ref(scores, tgts)
    assert jnp.allclose(out, ref, rtol=1e-5, atol=1e-5), (out, ref)

    print("KERNEL_OK")
</pallas_src>

<mosaic_0001>
module attributes {stable_mosaic.version = 11 : i64} {
  func.func @_ce_kernel(%arg0: i32, %arg1: i32, %arg2: memref<4x4x256xf32, #tpu.memory_space<vmem>>, %arg3: memref<4x1x256xi32, #tpu.memory_space<vmem>>, %arg4: memref<1x1x256xf32, #tpu.memory_space<vmem>>, %arg5: memref<1x1x256xf32, #tpu.memory_space<vmem>>) attributes {dimension_semantics = [#tpu.dimension_semantics<parallel>, #tpu.dimension_semantics<arbitrary>], iteration_bounds = array<i64: 1, 1>, scalar_prefetch = 0 : i64, scratch_operands = 0 : i64, tpu.core_type = #tpu.core_type<tc>, window_params = [{transform_indices = @transform_0, window_bounds = array<i64: 4, 4, 256>}, {transform_indices = @transform_1, window_bounds = array<i64: 4, 1, 256>}, {transform_indices = @transform_2, window_bounds = array<i64: 1, 1, 256>}, {transform_indices = @transform_3, window_bounds = array<i64: 1, 1, 256>}]} {
    %c0_i32 = arith.constant 0 : i32
    %0 = arith.cmpi eq, %arg1, %c0_i32 : i32
    %1 = arith.extui %0 : i1 to i32
    %c0_i32_0 = arith.constant 0 : i32
    %2 = arith.cmpi ne, %1, %c0_i32_0 : i32
    scf.if %2 {
      %cst_23 = arith.constant 0.000000e+00 : f32
      %36 = vector.broadcast %cst_23 : f32 to vector<1x1x256xf32>
      %c0_24 = arith.constant 0 : index
      %c0_25 = arith.constant 0 : index
      %c0_26 = arith.constant 0 : index
      %37 = vector.load %arg4[%c0_24, %c0_25, %c0_26] : memref<1x1x256xf32, #tpu.memory_space<vmem>>, vector<1x1x256xf32>
      tpu.vector_store %arg4[%c0_24, %c0_25, %c0_26], %36 {strides = array<i32>} : memref<1x1x256xf32, #tpu.memory_space<vmem>>, vector<1x1x256xf32>,
      %cst_27 = arith.constant 0.000000e+00 : f32
      %38 = vector.broadcast %cst_27 : f32 to vector<1x1x256xf32>
      %c0_28 = arith.constant 0 : index
      %c0_29 = arith.constant 0 : index
      %c0_30 = arith.constant 0 : index
      %39 = vector.load %arg5[%c0_28, %c0_29, %c0_30] : memref<1x1x256xf32, #tpu.memory_space<vmem>>, vector<1x1x256xf32>
      tpu.vector_store %arg5[%c0_28, %c0_29, %c0_30], %38 {strides = array<i32>} : memref<1x1x256xf32, #tpu.memory_space<vmem>>, vector<1x1x256xf32>,
    } else {
    }
    %c0 = arith.constant 0 : index
    %c0_1 = arith.constant 0 : index
    %c0_2 = arith.constant 0 : index
    %3 = vector.load %arg2[%c0, %c0_1, %c0_2] : memref<4x4x256xf32, #tpu.memory_space<vmem>>, vector<4x4x256xf32>
    %c0_3 = arith.constant 0 : index
    %c0_4 = arith.constant 0 : index
    %c0_5 = arith.constant 0 : index
    %4 = vector.load %arg3[%c0_3, %c0_4, %c0_5] : memref<4x1x256xi32, #tpu.memory_space<vmem>>, vector<4x1x256xi32>
    %cst = arith.constant dense<0xFF800000> : vector<4x256xf32>
    %5 = vector.multi_reduction <maximumf>, %3, %cst [1] : vector<4x4x256xf32> to vector<4x256xf32>
    %6 = vector.shape_cast %5 : vector<4x256xf32> to vector<4x1x256xf32>
    %7 = vector.broadcast %6 : vector<4x1x256xf32> to vector<4x4x256xf32>
    %8 = arith.subf %3, %7 : vector<4x4x256xf32>
    %9 = math.exp %8 : vector<4x4x256xf32>
    %cst_6 = arith.constant dense<0.000000e+00> : vector<4x256xf32>
    %10 = vector.multi_reduction <add>, %9, %cst_6 [1] : vector<4x4x256xf32> to vector<4x256xf32>
    %11 = vector.shape_cast %10 : vector<4x256xf32> to vector<4x1x256xf32>
    %12 = math.log %11 : vector<4x1x256xf32>
    %13 = tpu.iota {dimensions = array<i32: 1>} : vector<4x4x256xi32>
    %14 = vector.broadcast %4 : vector<4x1x256xi32> to vector<4x4x256xi32>
    %15 = arith.cmpi eq, %13, %14 : vector<4x4x256xi32>
    %cst_7 = arith.constant 0.000000e+00 : f32
    %16 = vector.broadcast %cst_7 : f32 to vector<4x4x256xf32>
    %17 = arith.select %15, %8, %16 : vector<4x4x256xi1>, vector<4x4x256xf32>
    %cst_8 = arith.constant dense<0.000000e+00> : vector<4x256xf32>
    %18 = vector.multi_reduction <add>, %17, %cst_8 [1] : vector<4x4x256xf32> to vector<4x256xf32>
    %19 = vector.shape_cast %18 : vector<4x256xf32> to vector<4x1x256xf32>
    %c255_i32 = arith.constant 255 : i32
    %20 = vector.broadcast %c255_i32 : i32 to vector<4x1x256xi32>
    %21 = arith.cmpi ne, %4, %20 : vector<4x1x256xi32>
    %22 = arith.extui %21 : vector<4x1x256xi1> to vector<4x1x256xi32>
    %23 = arith.sitofp %22 : vector<4x1x256xi32> to vector<4x1x256xf32>
    %24 = arith.subf %12, %19 : vector<4x1x256xf32>
    %25 = arith.mulf %24, %23 : vector<4x1x256xf32>
    %c0_9 = arith.constant 0 : index
    %c0_10 = arith.constant 0 : index
    %c0_11 = arith.constant 0 : index
    %26 = vector.load %arg4[%c0_9, %c0_10, %c0_11] : memref<1x1x256xf32, #tpu.memory_space<vmem>>, vector<1x1x256xf32>
    %cst_12 = arith.constant dense<0.000000e+00> : vector<1x256xf32>
    %27 = vector.multi_reduction <add>, %25, %cst_12 [0] : vector<4x1x256xf32> to vector<1x256xf32>
    %28 = vector.shape_cast %27 : vector<1x256xf32> to vector<1x1x256xf32>
    %29 = arith.addf %26, %28 : vector<1x1x256xf32>
    %c0_13 = arith.constant 0 : index
    %c0_14 = arith.constant 0 : index
    %c0_15 = arith.constant 0 : index
    %30 = vector.load %arg4[%c0_13, %c0_14, %c0_15] : memref<1x1x256xf32, #tpu.memory_space<vmem>>, vector<1x1x256xf32>
    tpu.vector_store %arg4[%c0_13, %c0_14, %c0_15], %29 {strides = array<i32>} : memref<1x1x256xf32, #tpu.memory_space<vmem>>, vector<1x1x256xf32>,
    %c0_16 = arith.constant 0 : index
    %c0_17 = arith.constant 0 : index
    %c0_18 = arith.constant 0 : index
    %31 = vector.load %arg5[%c0_16, %c0_17, %c0_18] : memref<1x1x256xf32, #tpu.memory_space<vmem>>, vector<1x1x256xf32>
    %cst_19 = arith.constant dense<0.000000e+00> : vector<1x256xf32>
    %32 = vector.multi_reduction <add>, %23, %cst_19 [0] : vector<4x1x256xf32> to vector<1x256xf32>
    %33 = vector.shape_cast %32 : vector<1x256xf32> to vector<1x1x256xf32>
    %34 = arith.addf %31, %33 : vector<1x1x256xf32>
    %c0_20 = arith.constant 0 : index
    %c0_21 = arith.constant 0 : index
    %c0_22 = arith.constant 0 : index
    %35 = vector.load %arg5[%c0_20, %c0_21, %c0_22] : memref<1x1x256xf32, #tpu.memory_space<vmem>>, vector<1x1x256xf32>
    tpu.vector_store %arg5[%c0_20, %c0_21, %c0_22], %34 {strides = array<i32>} : memref<1x1x256xf32, #tpu.memory_space<vmem>>, vector<1x1x256xf32>,
    return
  }
  func.func @transform_0(%arg0: i32, %arg1: i32) -> (i32, i32, i32) {
    %c0_i32 = arith.constant 0 : i32
    %c0_i32_0 = arith.constant 0 : i32
    return %arg0, %c0_i32, %arg1 : i32, i32, i32
  }
  func.func @transform_1(%arg0: i32, %arg1: i32) -> (i32, i32, i32) {
    %c0_i32 = arith.constant 0 : i32
    %c0_i32_0 = arith.constant 0 : i32
    return %arg0, %c0_i32, %arg1 : i32, i32, i32
  }
  func.func @transform_2(%arg0: i32, %arg1: i32) -> (i32, i32, i32) {
    %c0_i32 = arith.constant 0 : i32
    %c0_i32_0 = arith.constant 0 : i32
    %c0_i32_1 = arith.constant 0 : i32
    return %arg0, %c0_i32, %c0_i32_0 : i32, i32, i32
  }
  func.func @transform_3(%arg0: i32, %arg1: i32) -> (i32, i32, i32) {
    %c0_i32 = arith.constant 0 : i32
    %c0_i32_0 = arith.constant 0 : i32
    %c0_i32_1 = arith.constant 0 : i32
    return %arg0, %c0_i32, %c0_i32_0 : i32, i32, i32
  }
}

</mosaic_0001>

<bundles_post_ra>
// kernel: tpu_custom_call.1
= control target key start
LH: loop header
LB: loop body
LE: loop exit
PB: predicated region body
PF: predicated region fallthrough
CT: control target
= control target key end

     0   :  { %9 = vsyncpa [#allocation3], 0  ;;  %s987_s0 = inlined_call_operand.hbm [shape: f32[4,4,256], index: 0, kind: input, shape index: {}]   ;;  %s988_s1 = inlined_call_operand.hbm [shape: s32[4,1,256], index: 1, kind: input, shape index: {}]   ;;  %s989_s2 = inlined_call_operand.hbm [shape: f32[1,1,256], index: 2, kind: output, shape index: {0}]   ;;  %s990_s3 = inlined_call_operand.hbm [shape: f32[1,1,256], index: 3, kind: output, shape index: {1}]  }
   0x1   :  { %10 = vsyncpa [#allocation6], 0 }
   0x2   :  { %11 = vsyncpa [#allocation4], 0 }
   0x3   :  { %12 = vsyncpa [#allocation9], 0  ;;  %s675_s12 = smov [#allocation2]   ;;  %s579_s16 = scalar_lea.hbm %s987_s0, 512 }
   0x4   :  { %s18_s13 = sshll.u32 %s675_s12, 4  ;;  %p580_p0 = scmp.ne.s32.totalorder %s987_s0, %s579_s16  ;;  %s19_s13 = int_to_ptr.vmem [resolvable:$true] %s18_s13 }
   0x5   :  { %p583_p1 = scmp.lt.u32.totalorder %s579_s16, %s987_s0 }
   0x7   :  { %p585_p2 = pnand %p583_p1, %p580_p0 }
   0x9   :  { %588 = shalt.err (!%p585_p2)
}
   0xa   :  { %s589_s21 = scalar_lea.vmem %s19_s13, 512  ;;  %p594_p4 = scmp.lt.s32.totalorder %s19_s13, %s19_s13 }
   0xb   :  { %p590_p3 = scmp.ne.s32.totalorder %s19_s13, %s589_s21  ;;  %p595_p5 = scmp.lt.s32.totalorder %s589_s21, %s589_s21 }
   0xd   :  { %p596_p6 = por %p595_p5, %p594_p4 }
   0xf   :  { %p597_p7 = pnand %p596_p6, %p590_p3 }
  0x11   :  { %600 = shalt.err (!%p597_p7)
}
  0x12   :  { %s676_s22 = smov 128   ;;  %s677_s23 = smov 8  }
  0x13   :  { %24 = dma.hbm_to_vmem [thread:$0]  %s987_s0, 512, %s19_s13, [#allocation3], %s676_s22, %s676_s22, %s677_s23  }
  0x14   :  { %s678_s26 = smov [#allocation5]   ;;  %s601_s30 = scalar_lea.hbm %s988_s1, 128 }
  0x15   :  { %s30_s27 = sshll.u32 %s678_s26, 4  ;;  %p602_p8 = scmp.ne.s32.totalorder %s988_s1, %s601_s30  ;;  %s31_s27 = int_to_ptr.vmem [resolvable:$true] %s30_s27 }
  0x16   :  { %p605_p9 = scmp.lt.u32.totalorder %s601_s30, %s988_s1 }
  0x18   :  { %p607_p10 = pnand %p605_p9, %p602_p8 }
  0x1a   :  { %610 = shalt.err (!%p607_p10)
}
  0x1b   :  { %s611_s8 = scalar_lea.vmem %s31_s27, 128  ;;  %p616_p12 = scmp.lt.s32.totalorder %s31_s27, %s31_s27 }
  0x1c   :  { %p612_p11 = scmp.ne.s32.totalorder %s31_s27, %s611_s8  ;;  %p617_p13 = scmp.lt.s32.totalorder %s611_s8, %s611_s8 }
  0x1e   :  { %p618_p0 = por %p617_p13, %p616_p12 }
  0x20   :  { %p619_p1 = pnand %p618_p0, %p612_p11 }
  0x22   :  { %622 = shalt.err (!%p619_p1)
}
  0x23   :  { %s679_s0 = smov 32   ;;  %s680_s9 = smov 2  }
  0x24   :  { %36 = dma.hbm_to_vmem [thread:$0]  %s988_s1, 128, %s31_s27, [#allocation6], %s679_s0, %s679_s0, %s680_s9  }
  0x25   :  { %667 = dma.done.wait [#allocation3], 512  }
  0x26   :  { %668 = vsyncadd [#allocation3], 4294966784 }
  0x27   :  { %669 = dma.done.wait [#allocation6], 128  }
  0x28   :  { %670 = vsyncadd [#allocation6], 4294967168  ;;  %v47_v0 = vlaneseq  ;;  %v681_v2 = vmov 0.0   ;;  %vm73_vm1 = vcmask 1043456   ;;  %v741_v4 = vld [vmem:[#allocation2] sm:$0xff]  ;;  %v743_v5 = vld [vmem:[#allocation2 + $0x8] sm:$0xff] }
  0x29   :  { %v745_v6 = vld [vmem:[#allocation2 + $0x10] sm:$0xff]  ;;  %v750_v8 = vld [vmem:[#allocation2 + $0x18] sm:$0xff]  ;;  %v65_v9 = vcombine.high %v741_v4, %v741_v4  ;;  %v66_v10 = vcombine.high %v743_v5, %v743_v5  ;;  %v74_v12 = vsel %vm73_vm1, %v741_v4, -inf  ;;  %v88_v15 = vsel %vm73_vm1, %v743_v5, -inf  ;;  %v775_v57 = vld [vmem:[#allocation5] sm:$0x3] }
  0x2a   :  { %vm729_vm0 = vcmp.lt.s32.totalorder %v47_v0, 256  ;;  %v736_v3 = vshrl.u32 %v47_v0, 7  ;;  %v67_v11 = vcombine.high %v745_v6, %v745_v6  ;;  %v68_v13 = vcombine.high %v750_v8, %v750_v8  ;;  %v777_v62 = vld [vmem:[#allocation5 + $0x2] sm:$0x3]  ;;  %s683_s1 = smov [#allocation8]  }
  0x2b   :  { %51 = vst.msk [vmem:[#allocation7] sm:$0x3] %vm729_vm0, %v681_v2  ;;  %52 = vst.msk [vmem:[#allocation8] sm:$0x3] %vm729_vm0, %v681_v2  ;;  %v75_v14 = vrot.slane %v74_v12, 4  ;;  %v81_v17 = vsel %vm73_vm1, %v65_v9, -inf }
  0x2c   :  { %v748_v7 = vsub.s32 0, %v736_v3  ;;  %v765_v16 = vsub.s32 1, %v736_v3  ;;  %v89_v18 = vrot.slane %v88_v15, 4  ;;  %v95_v19 = vsel %vm73_vm1, %v66_v10, -inf  ;;  %s523_s12 = sshll.u32 %s683_s1, 4  ;;  %s524_s12 = int_to_ptr.vmem [resolvable:$true] %s523_s12 }
  0x2d   :  { %v102_v20 = vsel %vm73_vm1, %v745_v6, -inf  ;;  %v76_v21 = vmax.f32 %v74_v12, %v75_v14  ;;  %v82_v22 = vrot.slane %v81_v17, 4  ;;  %v96_v23 = vrot.slane %v95_v19, 4  ;;  %s623_s13 = scalar_lea.vmem %s524_s12, 32  ;;  %p628_p3 = scmp.lt.s32.totalorder %s524_s12, %s524_s12 }
  0x2e   :  { %v103_v24 = vrot.slane %v102_v20, 4  ;;  %v90_v25 = vmax.f32 %v88_v15, %v89_v18  ;;  %v109_v26 = vsel %vm73_vm1, %v67_v11, -inf  ;;  %v116_v27 = vsel %vm73_vm1, %v750_v8, -inf  ;;  %p624_p2 = scmp.ne.s32.totalorder %s524_s12, %s623_s13  ;;  %p629_p4 = scmp.lt.s32.totalorder %s623_s13, %s623_s13 }
  0x2f   :  { %v123_v28 = vsel %vm73_vm1, %v68_v13, -inf  ;;  %v77_v29 = vrot.slane %v76_v21, 2  ;;  %v83_v30 = vmax.f32 %v81_v17, %v82_v22  ;;  %v97_v31 = vmax.f32 %v95_v19, %v96_v23  ;;  %v779_v13 = vld [vmem:[#allocation5 + $0x4] sm:$0x3]  ;;  %v785_v19 = vld [vmem:[#allocation5 + $0x6] sm:$0x3] }
  0x30   :  { %v104_v32 = vmax.f32 %v102_v20, %v103_v24  ;;  %v91_v33 = vrot.slane %v90_v25, 2  ;;  %v110_v34 = vrot.slane %v109_v26, 4  ;;  %v117_v35 = vrot.slane %v116_v27, 4  ;;  %p630_p5 = por %p629_p4, %p628_p3 }
  0x31   :  { %v124_v36 = vrot.slane %v123_v28, 4  ;;  %v78_v37 = vmax.f32 %v76_v21, %v77_v29  ;;  %v84_v38 = vrot.slane %v83_v30, 2  ;;  %v98_v39 = vrot.slane %v97_v31, 2 }
  0x32   :  { %v105_v40 = vrot.slane %v104_v32, 2  ;;  %v92_v41 = vmax.f32 %v90_v25, %v91_v33  ;;  %v111_v42 = vmax.f32 %v109_v26, %v110_v34  ;;  %v118_v43 = vmax.f32 %v116_v27, %v117_v35  ;;  %p631_p6 = pnand %p630_p5, %p624_p2 }
  0x33   :  { %v125_v44 = vmax.f32 %v123_v28, %v124_v36  ;;  %v79_v45 = vrot.slane %v78_v37, 1  ;;  %v85_v46 = vmax.f32 %v83_v30, %v84_v38  ;;  %v99_v47 = vmax.f32 %v97_v31, %v98_v39 }
  0x34   :  { %v106_v48 = vmax.f32 %v104_v32, %v105_v40  ;;  %v93_v49 = vrot.slane %v92_v41, 1  ;;  %v112_v50 = vrot.slane %v111_v42, 2  ;;  %v119_v51 = vrot.slane %v118_v43, 2 }
  0x35   :  { %v126_v52 = vrot.slane %v125_v44, 2  ;;  %v80_v53 = vmax.f32 %v78_v37, %v79_v45  ;;  %v86_v54 = vrot.slane %v85_v46, 1  ;;  %v100_v55 = vrot.slane %v99_v47, 1 }
  0x36   :  { %v107_v56 = vrot.slane %v106_v48, 1  ;;  %v94_v58 = vmax.f32 %v92_v41, %v93_v49  ;;  %v113_v59 = vmax.f32 %v111_v42, %v112_v50  ;;  %v120_v60 = vmax.f32 %v118_v43, %v119_v51 }
  0x37   :  { %v127_v61 = vmax.f32 %v125_v44, %v126_v52  ;;  %v87_v63 = vmax.f32 %v85_v46, %v86_v54  ;;  %v101_v0 = vmax.f32 %v99_v47, %v100_v55  ;;  %v247_v17 = vrot.slane %v775_v57, %v748_v7 }
  0x38   :  { %v108_v9 = vmax.f32 %v106_v48, %v107_v56  ;;  %v114_v10 = vrot.slane %v113_v59, 1  ;;  %v121_v11 = vrot.slane %v120_v60, 1  ;;  %v251_v18 = vrot.slane %v775_v57, %v765_v16 }
  0x39   :  { %v128_v12 = vrot.slane %v127_v61, 1  ;;  %v138_v14 = vcombine.low %v80_v53, %v87_v63  ;;  %v139_v15 = vcombine.low %v94_v58, %v101_v0  ;;  %v255_v23 = vrot.slane %v777_v62, %v748_v7 }
  0x3a   :  { %v115_v20 = vmax.f32 %v113_v59, %v114_v10  ;;  %v122_v21 = vmax.f32 %v120_v60, %v121_v11  ;;  %v259_v26 = vrot.slane %v777_v62, %v765_v16  ;;  %v263_v29 = vrot.slane %v779_v13, %v748_v7 }
  0x3b   :  { %v129_v22 = vmax.f32 %v127_v61, %v128_v12  ;;  %v146_v24 = vsub.f32 %v741_v4, %v138_v14  ;;  %v147_v25 = vsub.f32 %v743_v5, %v139_v15  ;;  %v267_v32 = vrot.slane %v779_v13, %v765_v16 }
  0x3c   :  { %v140_v27 = vcombine.low %v108_v9, %v115_v20  ;;  %v271_v33 = vrot.slane %v785_v19, %v748_v7  ;;  %vm801_vm2 = vcmp.eq.s32.totalorder %v736_v3, %v247_v17  ;;  %vm277_vm3 = vcmp.eq.s32.totalorder %v736_v3, %v251_v18 }
  0x3d   :  { %v141_v28 = vcombine.low %v122_v21, %v129_v22  ;;  %v150_v30 = vmul.f32 1.442695, %v146_v24  ;;  %v152_v31 = vmul.f32 1.442695, %v147_v25  ;;  %vm807_vm4 = vcmp.eq.s32.totalorder %v736_v3, %v255_v23 }
  0x3e   :  { %v148_v4 = vsub.f32 %v745_v6, %v140_v27  ;;  %vm279_vm5 = vcmp.eq.s32.totalorder %v736_v3, %v259_v26  ;;  %v288_v36 = vcombine.high %v146_v24, %v146_v24  ;;  %v289_v6 = vcombine.high %v147_v25, %v147_v25 }
  0x3f   :  { %v812_v35 = vsub.f32 %v750_v8, %v141_v28  ;;  %555 = vpow2.f32 %v150_v30  ;;  %v275_v37 = vrot.slane %v785_v19, %v765_v16  ;;  %v296_v38 = vsel %vm801_vm2, %v146_v24, 0.0 }
  0x40   :  { %557 = vpow2.f32 %v152_v31  ;;  %v297_v39 = vsel %vm277_vm3, %v288_v36, 0.0  ;;  %v682_v40 = vmov 1966171168   ;;  %v154_v42 = vmul.f32 1.442695, %v148_v4 }
  0x41   :  { %v819_v41 = vunpack.c.l.s4 %v682_v40  ;;  %vm822_vm6 = vcmp.eq.s32.totalorder %v736_v3, %v263_v29  ;;  %v298_v43 = vsel %vm807_vm4, %v147_v25, 0.0  ;;  %v299_v44 = vsel %vm279_vm5, %v289_v6, 0.0 }
  0x42   :  { %v156_v45 = vmul.f32 1.442695, %v812_v35  ;;  %vm830_vm7 = vcmp.eq.s32.totalorder %v736_v3, %v267_v32  ;;  %vm835_vm8 = vcmp.eq.s32.totalorder %v736_v3, %v271_v33  ;;  %v290_v48 = vcombine.high %v148_v4, %v148_v4 }
  0x43   :  { %v304_v49 = vsel %vm73_vm1, %v296_v38, 0.0  ;;  %v311_v50 = vsel %vm73_vm1, %v297_v39, 0.0  ;;  %v318_v51 = vsel %vm73_vm1, %v298_v43, 0.0  ;;  %v325_v52 = vsel %vm73_vm1, %v299_v44, 0.0 }
  0x44   :  { %v291_v53 = vcombine.high %v812_v35, %v812_v35  ;;  %v305_v54 = vrot.slane %v304_v49, 4  ;;  %v312_v55 = vrot.slane %v311_v50, 4  ;;  %v319_v56 = vrot.slane %v318_v51, 4 }
  0x45   :  { %559 = vpow2.f32 %v154_v42  ;;  %vm283_vm9 = vcmp.eq.s32.totalorder %v736_v3, %v275_v37  ;;  %v326_v58 = vrot.slane %v325_v52, 4  ;;  %v300_v59 = vsel %vm822_vm6, %v148_v4, 0.0 }
  0x46   :  { %v306_v60 = vadd.f32 %v305_v54, %v304_v49  ;;  %v313_v61 = vadd.f32 %v312_v55, %v311_v50  ;;  %v320_v63 = vadd.f32 %v319_v56, %v318_v51  ;;  %561 = vpow2.f32 %v156_v45 }
  0x47   :  { %v301_v0 = vsel %vm830_vm7, %v290_v48, 0.0  ;;  %v302_v9 = vsel %vm835_vm8, %v812_v35, 0.0  ;;  %v453_v10 = vunpack.c.0.s8 %v819_v41  ;;  %v854_v12 = vsel %vm283_vm9, %v291_v53, 0.0 }
  0x48   :  { %v307_v14 = vrot.slane %v306_v60, 2  ;;  %v314_v15 = vrot.slane %v313_v61, 2  ;;  %v321_v17 = vrot.slane %v320_v63, 2  ;;  %v327_v22 = vadd.f32 %v326_v58, %v325_v52 }
  0x49   :  { %v556_v11 = vpop.eup %555  ;;  %v858_v23 = vsel %vm73_vm1, %v300_v59, 0.0  ;;  %v862_v27 = vsel %vm73_vm1, %v301_v0, 0.0  ;;  %vm360_vm10 = vcmp.ne.s32.totalorder %v775_v57, 255  ;;  %vm361_vm11 = vcmp.ne.s32.totalorder %v777_v62, 255 }
  0x4a   :  { %v558_v18 = vpop.eup %557  ;;  %v162_v20 = vcombine.high %v556_v11, %v556_v11  ;;  %v170_v21 = vsel %vm73_vm1, %v556_v11, 0.0  ;;  %v308_v30 = vadd.f32 %v307_v14, %v306_v60  ;;  %v315_v31 = vadd.f32 %v314_v15, %v313_v61 }
  0x4b   :  { %v163_v24 = vcombine.high %v558_v18, %v558_v18  ;;  %v171_v25 = vrot.slane %v170_v21, 4  ;;  %v184_v26 = vsel %vm73_vm1, %v558_v18, 0.0  ;;  %v322_v5 = vadd.f32 %v321_v17, %v320_v63 }
  0x4c   :  { %v177_v28 = vsel %vm73_vm1, %v162_v20, 0.0  ;;  %v185_v29 = vrot.slane %v184_v26, 4  ;;  %v328_v6 = vrot.slane %v327_v22, 2  ;;  %v333_v39 = vrot.slane %v858_v23, 4 }
  0x4d   :  { %v172_v32 = vadd.f32 %v171_v25, %v170_v21  ;;  %v178_v33 = vrot.slane %v177_v28, 4  ;;  %v191_v4 = vsel %vm73_vm1, %v163_v24, 0.0  ;;  %v309_v43 = vrot.slane %v308_v30, 1 }
  0x4e   :  { %v186_v34 = vadd.f32 %v185_v29, %v184_v26  ;;  %v192_v36 = vrot.slane %v191_v4, 4  ;;  %v340_v44 = vrot.slane %v862_v27, 4  ;;  %v316_v48 = vrot.slane %v315_v31, 1 }
  0x4f   :  { %v173_v37 = vrot.slane %v172_v32, 2  ;;  %v179_v38 = vadd.f32 %v178_v33, %v177_v28  ;;  %v560_v40 = vpop.eup %559  ;;  %v323_v49 = vrot.slane %v322_v5, 1  ;;  %v329_v53 = vadd.f32 %v328_v6, %v327_v22 }
  0x50   :  { %v187_v42 = vrot.slane %v186_v34, 2  ;;  %v193_v8 = vadd.f32 %v192_v36, %v191_v4  ;;  %v562_v50 = vpop.eup %561  ;;  %vm362_vm12 = vcmp.ne.s32.totalorder %v779_v13, 255  ;;  %vm363_vm13 = vcmp.ne.s32.totalorder %v785_v19, 255 }
  0x51   :  { %v174_v45 = vadd.f32 %v173_v37, %v172_v32  ;;  %v180_v46 = vrot.slane %v179_v38, 2  ;;  %v537_v56 = vsel %vm360_vm10, 1.0, %v681_v2  ;;  %v875_v60 = vadd.f32 %v309_v43, %v308_v30 }
  0x52   :  { %v188_v51 = vadd.f32 %v187_v42, %v186_v34  ;;  %v194_v52 = vrot.slane %v193_v8, 2  ;;  %v880_v61 = vsel %vm361_vm11, 1.0, %v681_v2  ;;  %v882_v11 = vadd.f32 %v316_v48, %v315_v31 }
  0x53   :  { %v175_v54 = vrot.slane %v174_v45, 1  ;;  %v181_v55 = vadd.f32 %v180_v46, %v179_v38  ;;  %v884_v14 = vadd.f32 %v323_v49, %v322_v5  ;;  %v330_v18 = vrot.slane %v329_v53, 1 }
  0x54   :  { %v189_v58 = vrot.slane %v188_v51, 1  ;;  %v195_v59 = vadd.f32 %v194_v52, %v193_v8  ;;  %v889_v57 = vsel %vm362_vm12, 1.0, %v681_v2  ;;  %v164_v21 = vcombine.high %v560_v40, %v560_v40 }
  0x55   :  { %v176_v63 = vadd.f32 %v175_v54, %v174_v45  ;;  %v182_v0 = vrot.slane %v181_v55, 1  ;;  %v165_v62 = vcombine.high %v562_v50, %v562_v50  ;;  %v198_v24 = vsel %vm73_vm1, %v560_v40, 0.0 }
  0x56   :  { %v190_v15 = vadd.f32 %v189_v58, %v188_v51  ;;  %v196_v17 = vrot.slane %v195_v59, 1  ;;  %v212_v25 = vsel %vm73_vm1, %v562_v50, 0.0  ;;  %v199_v26 = vrot.slane %v198_v24, 4 }
  0x57   :  { %v183_v20 = vadd.f32 %v182_v0, %v181_v55  ;;  %563 = vlog2.f32 %v176_v63  ;;  %v205_v28 = vsel %vm73_vm1, %v164_v21, 0.0  ;;  %v213_v29 = vrot.slane %v212_v25, 4 }
  0x58   :  { %v197_v22 = vadd.f32 %v196_v17, %v195_v59  ;;  %565 = vlog2.f32 %v190_v15  ;;  %v897_v13 = vsel %vm363_vm13, 1.0, %v681_v2  ;;  %v206_v30 = vrot.slane %v205_v28, 4 }
  0x59   :  { %567 = vlog2.f32 %v183_v20  ;;  %v219_v31 = vsel %vm73_vm1, %v165_v62, 0.0  ;;  %v901_v32 = vrot.slane %v537_v56, %v748_v7  ;;  %v200_v33 = vadd.f32 %v199_v26, %v198_v24 }
  0x5a   :  { %569 = vlog2.f32 %v197_v22  ;;  %v214_v4 = vadd.f32 %v213_v29, %v212_v25  ;;  %v220_v5 = vrot.slane %v219_v31, 4  ;;  %v207_v34 = vadd.f32 %v206_v30, %v205_v28 }
  0x5b   :  { %v334_v36 = vadd.f32 %v333_v39, %v858_v23  ;;  %v346_v19 = vsel %vm73_vm1, %v302_v9, 0.0  ;;  %v353_v2 = vsel %vm73_vm1, %v854_v12, 0.0  ;;  %v201_v6 = vrot.slane %v200_v33, 2 }
  0x5c   :  { %v215_v37 = vrot.slane %v214_v4, 2  ;;  %v221_v38 = vadd.f32 %v220_v5, %v219_v31  ;;  %v341_v40 = vadd.f32 %v340_v44, %v862_v27  ;;  %v331_v42 = vadd.f32 %v330_v18, %v329_v53 }
  0x5d   :  { %v208_v8 = vrot.slane %v207_v34, 2  ;;  %v347_v43 = vrot.slane %v346_v19, 4  ;;  %v354_v45 = vrot.slane %v353_v2, 4  ;;  %vm433_vm14 = vcmask 1040384  }
  0x5e   :  { %v391_v23 = vrot.slane %v537_v56, %v765_v16  ;;  %v202_v47 = vadd.f32 %v201_v6, %v200_v33  ;;  %v216_v39 = vadd.f32 %v215_v37, %v214_v4  ;;  %v222_v35 = vrot.slane %v221_v38, 2 }
  0x5f   :  { %v395_v9 = vrot.slane %v880_v61, %v748_v7  ;;  %v209_v46 = vadd.f32 %v208_v8, %v207_v34  ;;  %v335_v12 = vrot.slane %v334_v36, 2  ;;  %v348_v48 = vadd.f32 %v347_v43, %v346_v19 }
  0x60   :  { %v203_v50 = vrot.slane %v202_v47, 1  ;;  %v217_v51 = vrot.slane %v216_v39, 1  ;;  %v223_v27 = vadd.f32 %v222_v35, %v221_v38  ;;  %v342_v44 = vrot.slane %v341_v40, 2 }
  0x61   :  { %v564_v49 = vpop.eup %563  ;;  %v210_v54 = vrot.slane %v209_v46, 1  ;;  %v349_v55 = vrot.slane %v348_v48, 2  ;;  %v355_v58 = vadd.f32 %v354_v45, %v353_v2  ;;  %v399_v20 = vrot.slane %v880_v61, %v765_v16 }
  0x62   :  { %v566_v52 = vpop.eup %565  ;;  %v227_v53 = vmul.f32 0.6931472, %v564_v49  ;;  %v204_v63 = vadd.f32 %v203_v50, %v202_v47  ;;  %v218_v0 = vadd.f32 %v217_v51, %v216_v39  ;;  %v224_v15 = vrot.slane %v223_v27, 1 }
  0x63   :  { %v568_v56 = vpop.eup %567  ;;  %v231_v59 = vmul.f32 0.6931472, %v566_v52  ;;  %v919_v21 = vrot.slane %v889_v57, %v748_v7  ;;  %v211_v62 = vadd.f32 %v210_v54, %v209_v46  ;;  %v336_v25 = vadd.f32 %v335_v12, %v334_v36 }
  0x64   :  { %v570_v17 = vpop.eup %569  ;;  %v229_v18 = vmul.f32 0.6931472, %v568_v56  ;;  %v225_v24 = vadd.f32 %v224_v15, %v223_v27  ;;  %571 = vlog2.f32 %v204_v63  ;;  %v372_v26 = vsub.f32 %v227_v53, %v875_v60 }
  0x65   :  { %v233_v22 = vmul.f32 0.6931472, %v570_v17  ;;  %v374_v28 = vsub.f32 %v231_v59, %v884_v14  ;;  %573 = vlog2.f32 %v211_v62  ;;  %v343_v29 = vadd.f32 %v342_v44, %v341_v40 }
  0x66   :  { %v373_v30 = vsub.f32 %v229_v18, %v882_v11  ;;  %575 = vlog2.f32 %v218_v0  ;;  %v350_v31 = vadd.f32 %v349_v55, %v348_v48  ;;  %v356_v61 = vrot.slane %v355_v58, 2 }
  0x67   :  { %v375_v33 = vsub.f32 %v233_v22, %v331_v42  ;;  %v407_v4 = vrot.slane %v889_v57, %v765_v16  ;;  %v411_v5 = vrot.slane %v897_v13, %v748_v7  ;;  %577 = vlog2.f32 %v225_v24 }
  0x68   :  { %v415_v60 = vrot.slane %v897_v13, %v765_v16  ;;  %v337_v34 = vrot.slane %v336_v25, 1  ;;  %v357_v14 = vadd.f32 %v356_v61, %v355_v58  ;;  %v473_v36 = vsel %vm433_vm14, %v901_v32, 0.0 }
  0x69   :  { %v424_v11 = vmul.f32 %v901_v32, %v372_v26  ;;  %v426_v19 = vmul.f32 %v395_v9, %v374_v28  ;;  %v344_v2 = vrot.slane %v343_v29, 1  ;;  %v474_v6 = vsel %vm433_vm14, %v395_v9, 0.0  ;;  %v472_v26 = vld [vmem:[#allocation8] sm:$0x3] }
  0x6a   :  { %v425_v37 = vmul.f32 %v391_v23, %v373_v30  ;;  %v351_v57 = vrot.slane %v350_v31, 1  ;;  %v475_v38 = vadd.f32 %v474_v6, %v473_v36  ;;  %v476_v7 = vsel %vm433_vm14, %v919_v21, 0.0 }
  0x6b   :  { %v427_v40 = vmul.f32 %v399_v20, %v375_v33  ;;  %v478_v16 = vsel %vm433_vm14, %v411_v5, 0.0  ;;  %v480_v13 = vsel %vm433_vm14, %v391_v23, 0.0  ;;  %v481_v42 = vsel %vm433_vm14, %v399_v20, 0.0 }
  0x6c   :  { %v358_v8 = vrot.slane %v357_v14, 1  ;;  %v477_v43 = vadd.f32 %v476_v7, %v475_v38  ;;  %v482_v32 = vadd.f32 %v481_v42, %v480_v13  ;;  %v483_v45 = vsel %vm433_vm14, %v407_v4, 0.0 }
  0x6d   :  { %v338_v47 = vadd.f32 %v337_v34, %v336_v25  ;;  %v943_v39 = vsub.s32 %v453_v10, %v736_v3  ;;  %v485_v35 = vsel %vm433_vm14, %v415_v60, 0.0  ;;  %v345_v46 = vadd.f32 %v344_v2, %v343_v29 }
  0x6e   :  { %v572_v9 = vpop.eup %571  ;;  %v434_v12 = vsel %vm433_vm14, %v424_v11, 0.0  ;;  %v479_v23 = vadd.f32 %v478_v16, %v477_v43  ;;  %v484_v48 = vadd.f32 %v483_v45, %v482_v32  ;;  %v352_v51 = vadd.f32 %v351_v57, %v350_v31 }
  0x6f   :  { %v574_v49 = vpop.eup %573  ;;  %v235_v50 = vmul.f32 0.6931472, %v572_v9  ;;  %v435_v27 = vsel %vm433_vm14, %v426_v19, 0.0  ;;  %v441_v44 = vsel %vm433_vm14, %v425_v37, 0.0  ;;  %v359_v41 = vadd.f32 %v358_v8, %v357_v14 }
  0x70   :  { %v576_v52 = vpop.eup %575  ;;  %v237_v53 = vmul.f32 0.6931472, %v574_v49  ;;  %v442_v3 = vsel %vm433_vm14, %v427_v40, 0.0  ;;  %v486_v10 = vadd.f32 %v485_v35, %v484_v48  ;;  %v436_v63 = vadd.f32 %v435_v27, %v434_v12 }
  0x71   :  { %v578_v54 = vpop.eup %577  ;;  %v239_v55 = vmul.f32 0.6931472, %v576_v52  ;;  %v376_v58 = vsub.f32 %v235_v50, %v338_v47  ;;  %v443_v18 = vadd.f32 %v442_v3, %v441_v44 }
  0x72   :  { %v241_v56 = vmul.f32 0.6931472, %v578_v54  ;;  %v377_v59 = vsub.f32 %v237_v53, %v345_v46  ;;  %v489_v0 = vcombine.low %v479_v23, %v486_v10 }
  0x73   :  { %v378_v15 = vsub.f32 %v239_v55, %v352_v51  ;;  %v428_v17 = vmul.f32 %v919_v21, %v376_v58 }
  0x74   :  { %v379_v20 = vsub.f32 %v241_v56, %v359_v41  ;;  %v429_v62 = vmul.f32 %v407_v4, %v377_v59  ;;  %v496_v22 = vrot.slane %v489_v0, %v943_v39 }
  0x75   :  { %v430_v24 = vmul.f32 %v411_v5, %v378_v15  ;;  %v437_v25 = vsel %vm433_vm14, %v428_v17, 0.0 }
  0x76   :  { %v431_v28 = vmul.f32 %v415_v60, %v379_v20  ;;  %v438_v29 = vadd.f32 %v437_v25, %v436_v63  ;;  %v444_v30 = vsel %vm433_vm14, %v429_v62, 0.0  ;;  %v503_v31 = vrot.slane %v496_v22, %v943_v39 }
  0x77   :  { %v439_v61 = vsel %vm433_vm14, %v430_v24, 0.0  ;;  %v445_v21 = vadd.f32 %v444_v30, %v443_v18 }
  0x78   :  { %v440_v33 = vadd.f32 %v439_v61, %v438_v29  ;;  %v446_v4 = vsel %vm433_vm14, %v431_v28, 0.0  ;;  %v505_v34 = vadd.f32 %v503_v31, %v472_v26 }
  0x79   :  { %v447_v5 = vadd.f32 %v446_v4, %v445_v21 }
  0x7a   :  { %506 = vst.msk [vmem:[#allocation8] sm:$0x3] %vm729_vm0, %v505_v34 }
  0x7b   :  { %v450_v14 = vcombine.low %v440_v33, %v447_v5 }
  0x7c   :  { %634 = shalt.err (!%p631_p6)
}
  0x7d   :  { %s635_s16 = scalar_lea.hbm %s990_s3, 32 }
  0x7e   :  { %p636_p7 = scmp.ne.s32.totalorder %s990_s3, %s635_s16  ;;  %p639_p8 = scmp.lt.u32.totalorder %s635_s16, %s990_s3 }
  0x80   :  { %p641_p9 = pnand %p639_p8, %p636_p7 }
  0x82   :  { %644 = shalt.err (!%p641_p9)
}
  0x83   :  { %526 = dma.vmem_to_hbm [thread:$0]  %s524_s12, 32, %s990_s3, [#allocation9]   ;;  %v457_v60 = vrot.slane %v450_v14, %v943_v39  ;;  %v432_v36 = vld [vmem:[#allocation7] sm:$0x3] }
  0x84   :  { %s684_s23 = smov [#allocation7]  }
  0x85   :  { %s513_s24 = sshll.u32 %s684_s23, 4  ;;  %v464_v11 = vrot.slane %v457_v60, %v943_v39  ;;  %s514_s24 = int_to_ptr.vmem [resolvable:$true] %s513_s24 }
  0x86   :  { %s645_s25 = scalar_lea.vmem %s514_s24, 32  ;;  %p650_p11 = scmp.lt.s32.totalorder %s514_s24, %s514_s24 }
  0x87   :  { %v466_v19 = vadd.f32 %v464_v11, %v432_v36  ;;  %p646_p10 = scmp.ne.s32.totalorder %s514_s24, %s645_s25  ;;  %p651_p12 = scmp.lt.s32.totalorder %s645_s25, %s645_s25 }
  0x89   :  { %471 = vst.msk [vmem:[#allocation7] sm:$0x3] %vm729_vm0, %v466_v19  ;;  %p652_p13 = por %p651_p12, %p650_p11 }
  0x8b   :  { %p653_p0 = pnand %p652_p13, %p646_p10 }
  0x8d   :  { %656 = shalt.err (!%p653_p0)
}
  0x8e   :  { %s657_s27 = scalar_lea.hbm %s989_s2, 32 }
  0x8f   :  { %p658_p1 = scmp.ne.s32.totalorder %s989_s2, %s657_s27  ;;  %p661_p2 = scmp.lt.u32.totalorder %s657_s27, %s989_s2 }
  0x91   :  { %p663_p3 = pnand %p661_p2, %p658_p1 }
  0x93   :  { %666 = shalt.err (!%p663_p3)
}
  0x94   :  { %516 = dma.vmem_to_hbm [thread:$0]  %s514_s24, 32, %s989_s2, [#allocation4]  }
  0x95   :  { %671 = dma.done.wait [#allocation4], 32  }
  0x96   :  { %672 = vsyncadd [#allocation4], 4294967264 }
  0x97   :  { %673 = dma.done.wait [#allocation9], 32  }
  0x98   :  { %674 = vsyncadd [#allocation9], 4294967264 }
  0x99   :  { %533 = vsyncpa [#allocation3], 1 }
  0x9a   :  { %534 = vsyncpa [#allocation6], 1 }
  0x9b   :  { %535 = vsyncpa [#allocation4], 1 }
  0x9c   :  { %536 = vsyncpa [#allocation9], 1 }

</bundles_post_ra>
